<compile_context>
chip_gen: v5e
topology: v5e:2x2
jax: 0.10.0
libtpu: 0.0.40
codegen_flags: <defaults>
</compile_context>

<pallas_src>
import functools

import jax
import jax.numpy as jnp
from jax.experimental import pallas as pl
from jax.experimental.pallas import tpu as pltpu

_SELU_ALPHA = 1.6732632423543772
_SELU_SCALE = 1.0507009873554805
_LN_EPS = 1e-5


def _selu(x):
    # exp evaluated on the clamped value so the unselected branch cannot overflow.
    return _SELU_SCALE * jnp.where(
        x > 0, x, _SELU_ALPHA * (jnp.exp(jnp.minimum(x, 0.0)) - 1.0))


def _layernorm(x, gamma, beta):
    mean = jnp.mean(x, axis=-1, keepdims=True)
    var = jnp.mean(jnp.square(x - mean), axis=-1, keepdims=True)
    return (x - mean) * jax.lax.rsqrt(var + _LN_EPS) * gamma + beta


def _round_up(x, m):
    return ((x + m - 1) // m) * m


def _dqn_kernel(nk, input_size, hidden_sizes, output_size, *refs):
    """refs = (o, slab, w1, *w_mid, w_out, out).

    slab rows: 0 stock_mask(*1/conv_size) | 1 conv_w | 2 conv_b |
               then per hidden layer: b, gamma, beta | last row: b_out.
    """
    num_hidden = len(hidden_sizes)
    o_ref, slab_ref = refs[0], refs[1]
    w_refs = refs[2:2 + num_hidden]
    wo_ref = refs[2 + num_hidden]
    out_ref = refs[3 + num_hidden]

    o = o_ref[...]                                   # (tb, input_size)
    slab = slab_ref[...]                             # one tiny load covers every (1,N) parameter

    mask = slab[0:1, :input_size]                    # 1/conv_size on stock lanes, 0 on char lanes
    conv_w = slab[1:2, :nk]
    conv_b = slab[2:3, :nk]

    # Conv1d(1, nk, kernel_size=1) followed by mean over time:
    #   summary[b, k] = conv_w[k] * mean_t(stock[b, t]) + conv_b[k]
    stock_mean = jnp.sum(o * mask, axis=-1, keepdims=True)          # (tb, 1)
    ss = _selu(stock_mean * conv_w + conv_b)                        # (tb, nk)

    # Single stacked first-layer matmul: x = [SELU(summary), o]; the stacked weight has zero
    # rows under the stock lanes, so this equals Linear(cat([SELU(summary), chars])).
    h = jnp.concatenate([ss, o], axis=-1)                           # (tb, nk + input_size)

    row = 3
    for li in range(num_hidden):
        hw = hidden_sizes[li]
        b = slab[row:row + 1, :hw]
        g = slab[row + 1:row + 2, :hw]
        beta = slab[row + 2:row + 3, :hw]
        row += 3
        h = jnp.dot(h, w_refs[li][...], preferred_element_type=jnp.float32) + b
        h = _layernorm(_selu(h), g, beta)

    b_out = slab[row:row + 1, :output_size]
    out = jnp.dot(h, wo_ref[...], preferred_element_type=jnp.float32) + b_out
    out_ref[...] = out.astype(out_ref.dtype)


@functools.partial(jax.jit,
                   static_argnames=("nk", "input_size", "hidden_sizes", "output_size"))
def _dqn_forward(o, slab, w1, w_mid, w_out, *, nk, input_size, hidden_sizes, output_size):
    """Fused DQN forward.  o: (batch, input_size) f32 -> (batch, output_size) f32."""
    batch = o.shape[0]

    # Batch tile: multiple of 8 sublanes, up to 1024 rows per grid step (>=512 reaches ~85% of
    # HBM roofline; per-step overhead is ~0.35 us).  Tiny batches get a single small tile.
    tb = min(1024, _round_up(batch, 8))
    grid = (pl.cdiv(batch, tb),)

    flat = (slab, w1) + tuple(w_mid) + (w_out,)

    def resident(arr):
        return pl.BlockSpec(arr.shape, lambda i: (0, 0))            # full-array resident block

    in_specs = [pl.BlockSpec((tb, input_size), lambda i: (i, 0))] + [resident(a) for a in flat]
    # Output written at its true width: lane block == full array dim, no wrapper pad/slice copies.
    out_specs = pl.BlockSpec((tb, output_size), lambda i: (i, 0))

    kernel = functools.partial(_dqn_kernel, nk, input_size, hidden_sizes, output_size)

    # Ragged last batch tile: Pallas emits bounded block DMAs, so out-of-range rows are never
    # stored; the stale rows in the input buffer only feed per-row (discarded) compute.
    return pl.pallas_call(
        kernel,
        out_shape=jax.ShapeDtypeStruct((batch, output_size), jnp.float32),
        grid=grid,
        in_specs=in_specs,
        out_specs=out_specs,
        compiler_params=pltpu.CompilerParams(
            # On v7x, verify in a trace that the batch axis shards across both TensorCores;
            # if not, switch to an explicit core-parallel leading axis.
            dimension_semantics=("parallel",)),
    )(o, *flat)


class DQN:
    """JAX/Pallas port of the PyTorch DQN module (forward path only)."""

    def __init__(self, input_size, conv_size, hidden_sizes, n_kernels,
                 output_size=251, seed=42):
        if isinstance(hidden_sizes, int):
            hidden_sizes = [hidden_sizes]
        assert len(hidden_sizes) >= 1
        self.input_size = input_size
        self.conv_size = conv_size
        self.char_size = input_size - conv_size
        self.n_kernels = n_kernels
        self.hidden_sizes = tuple(hidden_sizes)
        self.output_size = output_size
        # NOTE: the PyTorch module also defines `self.normL = LayerNorm(input_size)` and a
        # `quantiles` arg, neither of which is used in forward(); both are omitted here.
        self.raw = self._init_raw(jax.random.PRNGKey(seed))
        self.packed = self._pack(self.raw)

    def _init_raw(self, key):
        nk = self.n_kernels
        transf_in = nk + self.char_size

        def linear(k, fan_in, fan_out):
            kw, kb = jax.random.split(k)
            bound = 1.0 / float(fan_in) ** 0.5
            w = jax.random.uniform(kw, (fan_in, fan_out), jnp.float32, -bound, bound)
            b = jax.random.uniform(kb, (1, fan_out), jnp.float32, -bound, bound)
            return w, b

        keys = jax.random.split(key, len(self.hidden_sizes) + 2)

        # Conv1d(1, n_kernels, kernel_size=1): per-kernel scale + bias (fan_in = 1).
        conv_w, conv_b = linear(keys[0], 1, nk)

        hidden = []
        sizes = [transf_in] + list(self.hidden_sizes)
        for li, (n_in, n_out) in enumerate(zip(sizes[:-1], sizes[1:])):
            w, b = linear(keys[1 + li], n_in, n_out)
            hidden.append({"w": w, "b": b,
                           "g": jnp.ones((1, n_out), jnp.float32),
                           "beta": jnp.zeros((1, n_out), jnp.float32)})

        w_out, b_out = linear(keys[-1], sizes[-1], self.output_size)
        return {"conv_w": conv_w, "conv_b": conv_b, "hidden": hidden,
                "w_out": w_out, "b_out": b_out}

    def _pack(self, raw):
        nk, cs, in_sz = self.n_kernels, self.conv_size, self.input_size
        slab_w = _round_up(max(in_sz, nk, max(self.hidden_sizes), self.output_size), 128)

        def row(v):
            v = jnp.asarray(v, jnp.float32).reshape(1, -1)
            return jnp.pad(v, ((0, 0), (0, slab_w - v.shape[1])))

        # Mask that implements mean over the stock lanes inside the kernel.
        stock_mask = jnp.concatenate(
            [jnp.full((1, cs), 1.0 / cs, jnp.float32),
             jnp.zeros((1, in_sz - cs), jnp.float32)], axis=-1)

        rows = [row(stock_mask), row(raw["conv_w"]), row(raw["conv_b"])]
        for layer in raw["hidden"]:
            rows += [row(layer["b"]), row(layer["g"]), row(layer["beta"])]
        rows.append(row(raw["b_out"]))
        slab = jnp.concatenate(rows, axis=0)          # (3 + 3*H + 1, slab_w)

        # Stacked first-layer weight for x = [SELU(summary), o]: zero rows under the stock lanes.
        w1_raw = raw["hidden"][0]["w"]                # (nk + char_size, h1)
        h1 = w1_raw.shape[1]
        w1 = jnp.concatenate(
            [w1_raw[:nk], jnp.zeros((cs, h1), jnp.float32), w1_raw[nk:]], axis=0)

        w_mid = tuple(layer["w"] for layer in raw["hidden"][1:])
        return {"slab": slab, "w1": w1, "w_mid": w_mid, "w_out": raw["w_out"]}

    def __call__(self, o):
        p = self.packed
        return _dqn_forward(o, p["slab"], p["w1"], p["w_mid"], p["w_out"],
                            nk=self.n_kernels, input_size=self.input_size,
                            hidden_sizes=self.hidden_sizes,
                            output_size=self.output_size)


def _dqn_reference(o, model):
    """Plain-JAX reference that follows the PyTorch forward literally."""
    r = model.raw
    cs = model.conv_size
    stock, chars = o[:, :cs], o[:, cs:]
    stock_mean = jnp.mean(stock, axis=-1, keepdims=True)
    ss = _selu(stock_mean * r["conv_w"] + r["conv_b"])
    h = jnp.concatenate([ss, chars], axis=-1)
    for layer in r["hidden"]:
        h = _layernorm(_selu(h @ layer["w"] + layer["b"]), layer["g"], layer["beta"])
    return h @ r["w_out"] + r["b_out"]


if __name__ == "__main__":
    batch = 8
    input_size, conv_size, n_kernels = 24, 16, 8
    hidden_sizes = [32, 32]
    output_size = 251  # PyTorch default

    model = DQN(input_size=input_size, conv_size=conv_size,
                hidden_sizes=hidden_sizes, n_kernels=n_kernels,
                output_size=output_size, seed=42)

    o = jax.random.normal(jax.random.PRNGKey(0), (batch, input_size), dtype=jnp.float32)

    q = model(o)
    jax.block_until_ready(q)
    assert q.shape == (batch, output_size)

    ref = _dqn_reference(o, model)
    assert bool(jnp.allclose(q, ref, atol=1e-4, rtol=1e-4)), "kernel != reference"

    print("KERNEL_OK")
</pallas_src>

<mosaic_0001>
module attributes {stable_mosaic.version = 11 : i64} {
  func.func @_dqn_kernel(%arg0: i32, %arg1: memref<8x24xf32, #tpu.memory_space<vmem>>, %arg2: memref<10x256xf32, #tpu.memory_space<vmem>>, %arg3: memref<32x32xf32, #tpu.memory_space<vmem>>, %arg4: memref<32x32xf32, #tpu.memory_space<vmem>>, %arg5: memref<32x251xf32, #tpu.memory_space<vmem>>, %arg6: memref<8x251xf32, #tpu.memory_space<vmem>>) attributes {dimension_semantics = [#tpu.dimension_semantics<parallel>], iteration_bounds = array<i64: 1>, scalar_prefetch = 0 : i64, scratch_operands = 0 : i64, tpu.core_type = #tpu.core_type<tc>, window_params = [{transform_indices = @transform_0, window_bounds = array<i64: 8, 24>}, {pipeline_mode = #tpu.pipeline_mode<synchronous>, transform_indices = @transform_1, window_bounds = array<i64: 10, 256>}, {pipeline_mode = #tpu.pipeline_mode<synchronous>, transform_indices = @transform_2, window_bounds = array<i64: 32, 32>}, {pipeline_mode = #tpu.pipeline_mode<synchronous>, transform_indices = @transform_3, window_bounds = array<i64: 32, 32>}, {pipeline_mode = #tpu.pipeline_mode<synchronous>, transform_indices = @transform_4, window_bounds = array<i64: 32, 251>}, {transform_indices = @transform_5, window_bounds = array<i64: 8, 251>}]} {
    %c0 = arith.constant 0 : index
    %c0_0 = arith.constant 0 : index
    %0 = vector.load %arg1[%c0, %c0_0] : memref<8x24xf32, #tpu.memory_space<vmem>>, vector<8x24xf32>
    %c0_1 = arith.constant 0 : index
    %c0_2 = arith.constant 0 : index
    %1 = vector.load %arg2[%c0_1, %c0_2] : memref<10x256xf32, #tpu.memory_space<vmem>>, vector<10x256xf32>
    %2 = vector.extract_strided_slice %1 {offsets = [0, 0], sizes = [1, 24], strides = [1, 1]} : vector<10x256xf32> to vector<1x24xf32>
    %3 = vector.extract_strided_slice %1 {offsets = [1, 0], sizes = [1, 8], strides = [1, 1]} : vector<10x256xf32> to vector<1x8xf32>
    %4 = vector.extract_strided_slice %1 {offsets = [2, 0], sizes = [1, 8], strides = [1, 1]} : vector<10x256xf32> to vector<1x8xf32>
    %5 = vector.broadcast %2 : vector<1x24xf32> to vector<8x24xf32>
    %6 = arith.mulf %0, %5 : vector<8x24xf32>
    %cst = arith.constant dense<0.000000e+00> : vector<8xf32>
    %7 = vector.multi_reduction <add>, %6, %cst [1] : vector<8x24xf32> to vector<8xf32>
    %8 = vector.shape_cast %7 : vector<8xf32> to vector<8x1xf32>
    %9 = vector.broadcast %8 : vector<8x1xf32> to vector<8x8xf32>
    %10 = vector.broadcast %3 : vector<1x8xf32> to vector<8x8xf32>
    %11 = arith.mulf %9, %10 : vector<8x8xf32>
    %12 = vector.broadcast %4 : vector<1x8xf32> to vector<8x8xf32>
    %13 = arith.addf %11, %12 : vector<8x8xf32>
    %cst_3 = arith.constant 0.000000e+00 : f32
    %14 = vector.broadcast %cst_3 : f32 to vector<8x8xf32>
    %15 = arith.cmpf ogt, %13, %14 : vector<8x8xf32>
    %cst_4 = arith.constant 0.000000e+00 : f32
    %16 = vector.broadcast %cst_4 : f32 to vector<8x8xf32>
    %17 = arith.minimumf %13, %16 : vector<8x8xf32>
    %18 = math.exp %17 : vector<8x8xf32>
    %cst_5 = arith.constant 1.000000e+00 : f32
    %19 = vector.broadcast %cst_5 : f32 to vector<8x8xf32>
    %20 = arith.subf %18, %19 : vector<8x8xf32>
    %cst_6 = arith.constant 1.67326319 : f32
    %21 = vector.broadcast %cst_6 : f32 to vector<8x8xf32>
    %22 = arith.mulf %21, %20 : vector<8x8xf32>
    %23 = arith.select %15, %13, %22 : vector<8x8xi1>, vector<8x8xf32>
    %cst_7 = arith.constant 1.05070102 : f32
    %24 = vector.broadcast %cst_7 : f32 to vector<8x8xf32>
    %25 = arith.mulf %24, %23 : vector<8x8xf32>
    %26 = tpu.concatenate %25, %0 in 1 : vector<8x8xf32>, vector<8x24xf32> -> vector<8x32xf32>
    %27 = vector.extract_strided_slice %1 {offsets = [3, 0], sizes = [1, 32], strides = [1, 1]} : vector<10x256xf32> to vector<1x32xf32>
    %28 = vector.extract_strided_slice %1 {offsets = [4, 0], sizes = [1, 32], strides = [1, 1]} : vector<10x256xf32> to vector<1x32xf32>
    %29 = vector.extract_strided_slice %1 {offsets = [5, 0], sizes = [1, 32], strides = [1, 1]} : vector<10x256xf32> to vector<1x32xf32>
    %c0_8 = arith.constant 0 : index
    %c0_9 = arith.constant 0 : index
    %30 = vector.load %arg3[%c0_8, %c0_9] : memref<32x32xf32, #tpu.memory_space<vmem>>, vector<32x32xf32>
    %cst_10 = arith.constant dense<0.000000e+00> : vector<8x32xf32>
    %31 = tpu.matmul %26, %30, %cst_10 {dimension_numbers = #tpu.dot_dimension_numbers<[1], [0], [0], [1], [0, 0, 1, 1], [], []>} : vector<8x32xf32>, vector<32x32xf32>, vector<8x32xf32> -> vector<8x32xf32>
    %32 = vector.broadcast %27 : vector<1x32xf32> to vector<8x32xf32>
    %33 = arith.addf %31, %32 : vector<8x32xf32>
    %cst_11 = arith.constant 0.000000e+00 : f32
    %34 = vector.broadcast %cst_11 : f32 to vector<8x32xf32>
    %35 = arith.cmpf ogt, %33, %34 : vector<8x32xf32>
    %cst_12 = arith.constant 0.000000e+00 : f32
    %36 = vector.broadcast %cst_12 : f32 to vector<8x32xf32>
    %37 = arith.minimumf %33, %36 : vector<8x32xf32>
    %38 = math.exp %37 : vector<8x32xf32>
    %cst_13 = arith.constant 1.000000e+00 : f32
    %39 = vector.broadcast %cst_13 : f32 to vector<8x32xf32>
    %40 = arith.subf %38, %39 : vector<8x32xf32>
    %cst_14 = arith.constant 1.67326319 : f32
    %41 = vector.broadcast %cst_14 : f32 to vector<8x32xf32>
    %42 = arith.mulf %41, %40 : vector<8x32xf32>
    %43 = arith.select %35, %33, %42 : vector<8x32xi1>, vector<8x32xf32>
    %cst_15 = arith.constant 1.05070102 : f32
    %44 = vector.broadcast %cst_15 : f32 to vector<8x32xf32>
    %45 = arith.mulf %44, %43 : vector<8x32xf32>
    %cst_16 = arith.constant dense<0.000000e+00> : vector<8xf32>
    %46 = vector.multi_reduction <add>, %45, %cst_16 [1] : vector<8x32xf32> to vector<8xf32>
    %47 = vector.shape_cast %46 : vector<8xf32> to vector<8x1xf32>
    %cst_17 = arith.constant 3.200000e+01 : f32
    %48 = vector.broadcast %cst_17 : f32 to vector<8x1xf32>
    %49 = arith.divf %47, %48 : vector<8x1xf32>
    %50 = vector.broadcast %49 : vector<8x1xf32> to vector<8x32xf32>
    %51 = arith.subf %45, %50 : vector<8x32xf32>
    %52 = arith.mulf %51, %51 : vector<8x32xf32>
    %cst_18 = arith.constant dense<0.000000e+00> : vector<8xf32>
    %53 = vector.multi_reduction <add>, %52, %cst_18 [1] : vector<8x32xf32> to vector<8xf32>
    %54 = vector.shape_cast %53 : vector<8xf32> to vector<8x1xf32>
    %cst_19 = arith.constant 3.200000e+01 : f32
    %55 = vector.broadcast %cst_19 : f32 to vector<8x1xf32>
    %56 = arith.divf %54, %55 : vector<8x1xf32>
    %57 = vector.broadcast %49 : vector<8x1xf32> to vector<8x32xf32>
    %58 = arith.subf %45, %57 : vector<8x32xf32>
    %cst_20 = arith.constant 9.99999974E-6 : f32
    %59 = vector.broadcast %cst_20 : f32 to vector<8x1xf32>
    %60 = arith.addf %56, %59 : vector<8x1xf32>
    %61 = math.rsqrt %60 : vector<8x1xf32>
    %62 = vector.broadcast %61 : vector<8x1xf32> to vector<8x32xf32>
    %63 = arith.mulf %58, %62 : vector<8x32xf32>
    %64 = vector.broadcast %28 : vector<1x32xf32> to vector<8x32xf32>
    %65 = arith.mulf %63, %64 : vector<8x32xf32>
    %66 = vector.broadcast %29 : vector<1x32xf32> to vector<8x32xf32>
    %67 = arith.addf %65, %66 : vector<8x32xf32>
    %68 = vector.extract_strided_slice %1 {offsets = [6, 0], sizes = [1, 32], strides = [1, 1]} : vector<10x256xf32> to vector<1x32xf32>
    %69 = vector.extract_strided_slice %1 {offsets = [7, 0], sizes = [1, 32], strides = [1, 1]} : vector<10x256xf32> to vector<1x32xf32>
    %70 = vector.extract_strided_slice %1 {offsets = [8, 0], sizes = [1, 32], strides = [1, 1]} : vector<10x256xf32> to vector<1x32xf32>
    %c0_21 = arith.constant 0 : index
    %c0_22 = arith.constant 0 : index
    %71 = vector.load %arg4[%c0_21, %c0_22] : memref<32x32xf32, #tpu.memory_space<vmem>>, vector<32x32xf32>
    %cst_23 = arith.constant dense<0.000000e+00> : vector<8x32xf32>
    %72 = tpu.matmul %67, %71, %cst_23 {dimension_numbers = #tpu.dot_dimension_numbers<[1], [0], [0], [1], [0, 0, 1, 1], [], []>} : vector<8x32xf32>, vector<32x32xf32>, vector<8x32xf32> -> vector<8x32xf32>
    %73 = vector.broadcast %68 : vector<1x32xf32> to vector<8x32xf32>
    %74 = arith.addf %72, %73 : vector<8x32xf32>
    %cst_24 = arith.constant 0.000000e+00 : f32
    %75 = vector.broadcast %cst_24 : f32 to vector<8x32xf32>
    %76 = arith.cmpf ogt, %74, %75 : vector<8x32xf32>
    %cst_25 = arith.constant 0.000000e+00 : f32
    %77 = vector.broadcast %cst_25 : f32 to vector<8x32xf32>
    %78 = arith.minimumf %74, %77 : vector<8x32xf32>
    %79 = math.exp %78 : vector<8x32xf32>
    %cst_26 = arith.constant 1.000000e+00 : f32
    %80 = vector.broadcast %cst_26 : f32 to vector<8x32xf32>
    %81 = arith.subf %79, %80 : vector<8x32xf32>
    %cst_27 = arith.constant 1.67326319 : f32
    %82 = vector.broadcast %cst_27 : f32 to vector<8x32xf32>
    %83 = arith.mulf %82, %81 : vector<8x32xf32>
    %84 = arith.select %76, %74, %83 : vector<8x32xi1>, vector<8x32xf32>
    %cst_28 = arith.constant 1.05070102 : f32
    %85 = vector.broadcast %cst_28 : f32 to vector<8x32xf32>
    %86 = arith.mulf %85, %84 : vector<8x32xf32>
    %cst_29 = arith.constant dense<0.000000e+00> : vector<8xf32>
    %87 = vector.multi_reduction <add>, %86, %cst_29 [1] : vector<8x32xf32> to vector<8xf32>
    %88 = vector.shape_cast %87 : vector<8xf32> to vector<8x1xf32>
    %cst_30 = arith.constant 3.200000e+01 : f32
    %89 = vector.broadcast %cst_30 : f32 to vector<8x1xf32>
    %90 = arith.divf %88, %89 : vector<8x1xf32>
    %91 = vector.broadcast %90 : vector<8x1xf32> to vector<8x32xf32>
    %92 = arith.subf %86, %91 : vector<8x32xf32>
    %93 = arith.mulf %92, %92 : vector<8x32xf32>
    %cst_31 = arith.constant dense<0.000000e+00> : vector<8xf32>
    %94 = vector.multi_reduction <add>, %93, %cst_31 [1] : vector<8x32xf32> to vector<8xf32>
    %95 = vector.shape_cast %94 : vector<8xf32> to vector<8x1xf32>
    %cst_32 = arith.constant 3.200000e+01 : f32
    %96 = vector.broadcast %cst_32 : f32 to vector<8x1xf32>
    %97 = arith.divf %95, %96 : vector<8x1xf32>
    %98 = vector.broadcast %90 : vector<8x1xf32> to vector<8x32xf32>
    %99 = arith.subf %86, %98 : vector<8x32xf32>
    %cst_33 = arith.constant 9.99999974E-6 : f32
    %100 = vector.broadcast %cst_33 : f32 to vector<8x1xf32>
    %101 = arith.addf %97, %100 : vector<8x1xf32>
    %102 = math.rsqrt %101 : vector<8x1xf32>
    %103 = vector.broadcast %102 : vector<8x1xf32> to vector<8x32xf32>
    %104 = arith.mulf %99, %103 : vector<8x32xf32>
    %105 = vector.broadcast %69 : vector<1x32xf32> to vector<8x32xf32>
    %106 = arith.mulf %104, %105 : vector<8x32xf32>
    %107 = vector.broadcast %70 : vector<1x32xf32> to vector<8x32xf32>
    %108 = arith.addf %106, %107 : vector<8x32xf32>
    %109 = vector.extract_strided_slice %1 {offsets = [9, 0], sizes = [1, 251], strides = [1, 1]} : vector<10x256xf32> to vector<1x251xf32>
    %c0_34 = arith.constant 0 : index
    %c0_35 = arith.constant 0 : index
    %110 = vector.load %arg5[%c0_34, %c0_35] : memref<32x251xf32, #tpu.memory_space<vmem>>, vector<32x251xf32>
    %cst_36 = arith.constant dense<0.000000e+00> : vector<8x251xf32>
    %111 = tpu.matmul %108, %110, %cst_36 {dimension_numbers = #tpu.dot_dimension_numbers<[1], [0], [0], [1], [0, 0, 1, 1], [], []>} : vector<8x32xf32>, vector<32x251xf32>, vector<8x251xf32> -> vector<8x251xf32>
    %112 = vector.broadcast %109 : vector<1x251xf32> to vector<8x251xf32>
    %113 = arith.addf %111, %112 : vector<8x251xf32>
    %c0_37 = arith.constant 0 : index
    %c0_38 = arith.constant 0 : index
    %114 = vector.load %arg6[%c0_37, %c0_38] : memref<8x251xf32, #tpu.memory_space<vmem>>, vector<8x251xf32>
    tpu.vector_store %arg6[%c0_37, %c0_38], %113 {strides = array<i32>} : memref<8x251xf32, #tpu.memory_space<vmem>>, vector<8x251xf32>,
    return
  }
  func.func @transform_0(%arg0: i32) -> (i32, i32) {
    %c0_i32 = arith.constant 0 : i32
    %c0_i32_0 = arith.constant 0 : i32
    return %arg0, %c0_i32 : i32, i32
  }
  func.func @transform_1(%arg0: i32) -> (i32, i32) {
    %c0_i32 = arith.constant 0 : i32
    %c0_i32_0 = arith.constant 0 : i32
    %c0_i32_1 = arith.constant 0 : i32
    return %c0_i32, %c0_i32_0 : i32, i32
  }
  func.func @transform_2(%arg0: i32) -> (i32, i32) {
    %c0_i32 = arith.constant 0 : i32
    %c0_i32_0 = arith.constant 0 : i32
    %c0_i32_1 = arith.constant 0 : i32
    return %c0_i32, %c0_i32_0 : i32, i32
  }
  func.func @transform_3(%arg0: i32) -> (i32, i32) {
    %c0_i32 = arith.constant 0 : i32
    %c0_i32_0 = arith.constant 0 : i32
    %c0_i32_1 = arith.constant 0 : i32
    return %c0_i32, %c0_i32_0 : i32, i32
  }
  func.func @transform_4(%arg0: i32) -> (i32, i32) {
    %c0_i32 = arith.constant 0 : i32
    %c0_i32_0 = arith.constant 0 : i32
    %c0_i32_1 = arith.constant 0 : i32
    return %c0_i32, %c0_i32_0 : i32, i32
  }
  func.func @transform_5(%arg0: i32) -> (i32, i32) {
    %c0_i32 = arith.constant 0 : i32
    %c0_i32_0 = arith.constant 0 : i32
    return %arg0, %c0_i32 : i32, i32
  }
}

</mosaic_0001>

<bundles_post_ra>
// kernel: _dqn_forward.1
= control target key start
LH: loop header
LB: loop body
LE: loop exit
PB: predicated region body
PF: predicated region fallthrough
CT: control target
= control target key end

     0   :  { %10 = vsyncpa [#allocation3], 0  ;;  %s606_s0 = inlined_call_operand.hbm [shape: f32[8,24], index: 0, kind: input, shape index: {}]   ;;  %s607_s1 = inlined_call_operand.hbm [shape: f32[10,256], index: 1, kind: input, shape index: {}]   ;;  %s608_s2 = inlined_call_operand.hbm [shape: f32[32,32], index: 2, kind: input, shape index: {}]   ;;  %s609_s3 = inlined_call_operand.hbm [shape: f32[32,32], index: 3, kind: input, shape index: {}]   ;;  %s610_s4 = inlined_call_operand.hbm [shape: f32[32,251], index: 4, kind: input, shape index: {}]   ;;  %s611_s5 = inlined_call_operand.hbm [shape: f32[8,251], index: 5, kind: output, shape index: {}]  }
   0x1   :  { %11 = vsyncpa [#allocation6], 0 }
   0x2   :  { %12 = vsyncpa [#allocation9], 0  ;;  %s29_s20 = sshll.u32 %s607_s1, 4  ;;  %s30_s20 = int_to_ptr.hbm [resolvable:$true] %s29_s20 }
   0x3   :  { %13 = vsyncpa [#allocation4], 0  ;;  %s514_s21 = smov [#allocation5]   ;;  %s515_s23 = smov 256  }
   0x4   :  { %s31_s22 = sshll.u32 %s514_s21, 4  ;;  %s516_s24 = smov 16   ;;  %s32_s22 = int_to_ptr.vmem [resolvable:$true] %s31_s22 }
   0x5   :  { %37 = dma.hbm_to_vmem [thread:$0]  %s30_s20, 512, %s32_s22, [#allocation6], %s515_s23, %s515_s23, %s516_s24  }
   0x6   :  { %s55_s27 = sshll.u32 %s609_s3, 4  ;;  %s517_s28 = smov [#allocation8]   ;;  %s56_s27 = int_to_ptr.hbm [resolvable:$true] %s55_s27 }
   0x7   :  { %s57_s29 = sshll.u32 %s517_s28, 4  ;;  %s19_s6 = sshll.u32 %s606_s0, 4  ;;  %s58_s29 = int_to_ptr.vmem [resolvable:$true] %s57_s29  ;;  %s20_s6 = int_to_ptr.hbm [resolvable:$true] %s19_s6 }
   0x8   :  { %s518_s7 = smov 128   ;;  %s519_s8 = smov 8  }
   0x9   :  { %63 = dma.hbm_to_vmem [thread:$0]  %s56_s27, 512, %s58_s29, [#allocation9], %s518_s7, %s518_s7, %s519_s8  }
   0xa   :  { %s42_s11 = sshll.u32 %s608_s2, 4  ;;  %s520_s12 = smov [#allocation2]   ;;  %s43_s11 = int_to_ptr.hbm [resolvable:$true] %s42_s11 }
   0xb   :  { %s21_s13 = sshll.u32 %s520_s12, 4  ;;  %s521_s3 = smov [#allocation7]   ;;  %s22_s13 = int_to_ptr.vmem [resolvable:$true] %s21_s13 }
   0xc   :  { %24 = dma.hbm_to_vmem [thread:$0]  %s20_s6, 128, %s22_s13, [#allocation3]  }
   0xd   :  { %s44_s14 = sshll.u32 %s521_s3, 4  ;;  %s68_s0 = sshll.u32 %s610_s4, 4  ;;  %s45_s14 = int_to_ptr.vmem [resolvable:$true] %s44_s14  ;;  %s69_s0 = int_to_ptr.hbm [resolvable:$true] %s68_s0 }
   0xe   :  { %50 = dma.hbm_to_vmem [thread:$0]  %s43_s11, 512, %s45_s14, [#allocation6], %s518_s7, %s518_s7, %s519_s8  }
   0xf   :  { %s522_s17 = smov [#allocation10]  }
  0x10   :  { %s70_s18 = sshll.u32 %s522_s17, 4  ;;  %s71_s18 = int_to_ptr.vmem [resolvable:$true] %s70_s18 }
  0x11   :  { %76 = dma.hbm_to_vmem [thread:$0]  %s69_s0, 1024, %s71_s18, [#allocation9], %s515_s23, %s515_s23, %s516_s24  }
  0x12   :  { %506 = dma.done.wait [#allocation3], 128  }
  0x13   :  { %507 = vsyncadd [#allocation3], 4294967168 }
  0x14   :  { %508 = dma.done.wait [#allocation6], 1024  }
  0x15   :  { %509 = vsyncadd [#allocation6], 4294966272 }
  0x16   :  { %510 = dma.done.wait [#allocation9], 1536  }
  0x17   :  { %511 = vsyncadd [#allocation9], 4294965760  ;;  %v97_v0 = vld [vmem:[#allocation2] sm:$0xff]  ;;  %v578_v1 = vld [vmem:[#allocation5] sm:$0xff]  ;;  %vm103_vm0 = vcmask 195584   ;;  %vm123_vm2 = vcmask 64512  }
  0x18   :  { %v101_v2 = vperm.slane %v578_v1, 0  ;;  %v128_v5 = vld [vmem:[#allocation7 + $0x18] sm:$0xff]  ;;  %v127_v6 = vld [vmem:[#allocation7 + $0x10] sm:$0xff]  ;;  %v126_v7 = vld [vmem:[#allocation7 + $0x8] sm:$0xff]  ;;  %v107_v9 = vperm.slane %v578_v1, 1  ;;  %v109_v10 = vperm.slane %v578_v1, 2 }
  0x19   :  { %146 = vmatpush.msra.mxu0 %v128_v5  ;;  %v125_v8 = vld [vmem:[#allocation7] sm:$0xff]  ;;  %vm130_vm3 = vcmask 261120   ;;  %v129_v23 = vperm.slane %v578_v1, 3  ;;  %v523_v34 = vmov 32.0   ;;  %v198_v46 = vld [vmem:[#allocation8 + $0x18] sm:$0xff]  ;;  %v197_v47 = vld [vmem:[#allocation8 + $0x10] sm:$0xff] }
  0x1a   :  { %v102_v3 = vmul.f32 %v101_v2, %v97_v0  ;;  %215 = vmatpush.msra.mxu1 %v198_v46  ;;  %v196_v48 = vld [vmem:[#allocation8 + $0x8] sm:$0xff]  ;;  %v195_v49 = vld [vmem:[#allocation8] sm:$0xff]  ;;  %v191_v59 = vperm.slane %v578_v1, 4  ;;  %v193_v62 = vperm.slane %v578_v1, 5  ;;  %v199_v2 = vperm.slane %v578_v1, 6  ;;  %s524_s2 = smov [#allocation11]  }
  0x1b   :  { %147 = vmatpush.msra.mxu0 %v127_v6  ;;  %s318_s4 = sshll.u32 %s524_s2, 4  ;;  %s320_s21 = sshll.u32 %s611_s5, 4  ;;  %vm311_vm13 = vcmask 1006592   ;;  %s319_s4 = int_to_ptr.vmem [resolvable:$true] %s318_s4  ;;  %s321_s21 = int_to_ptr.hbm [resolvable:$true] %s320_s21 }
  0x1c   :  { %v104_v4 = vsel %vm103_vm0, %v102_v3, 0.0  ;;  %216 = vmatpush.msra.mxu1 %v197_v47 }
  0x1d   :  { %105 = vadd.xlane.f32.xlu0 %v104_v4  ;;  %148 = vmatpush.msra.mxu0 %v126_v7 }
  0x1e   :  { %217 = vmatpush.msra.mxu1 %v196_v48 }
  0x1f   :  { %149 = vmatpush.msra.mxu0 %v125_v8 }
  0x20   :  { %218 = vmatpush.msra.mxu1 %v195_v49 }
  0x31   :  { %120 = vrot.lane.b32.xlu0 %v97_v0, %s519_s8 }
  0x90   :  { %v106_v11 = vpop.xlane.xlu0 %105 }
  0x91   :  { %v108_v12 = vmul.f32 %v107_v9, %v106_v11 }
  0x93   :  { %v110_v13 = vadd.f32 %v109_v10, %v108_v12 }
  0x95   :  { %v112_v14 = vmin.f32 %v110_v13, 0.0  ;;  %vm111_vm1 = vcmp.gt.f32.partialorder %v110_v13, 0.0 }
  0x97   :  { %v113_v15 = vmul.f32 1.442695, %v112_v14 }
  0x99   :  { %350 = vpow2.f32 %v113_v15 }
  0x9f   :  { %v351_v16 = vpop.eup %350 }
  0xa0   :  { %v332_v17 = vadd.f32 -1.0, %v351_v16 }
  0xa2   :  { %v116_v18 = vmul.f32 1.6732632, %v332_v17 }
  0xa3   :  { %v121_v19 = vpop.permute.xlu0 %120 }
  0xa4   :  { %v117_v20 = vsel %vm111_vm1, %v110_v13, %v116_v18  ;;  %v263_v18 = vld [vmem:[#allocation10 + $0x30] sm:$0xff] }
  0xa5   :  { %v118_v21 = vmul.f32 1.050701, %v117_v20  ;;  %282 = vmatpush.msra.mxu2 %v263_v18  ;;  %v261_v20 = vld [vmem:[#allocation10 + $0x20] sm:$0xff] }
  0xa7   :  { %v124_v22 = vsel %vm123_vm2, %v118_v21, %v121_v19  ;;  %v264_v19 = vld [vmem:[#allocation10 + $0x38] sm:$0xff]  ;;  %v262_v21 = vld [vmem:[#allocation10 + $0x28] sm:$0xff]  ;;  %283 = vmatpush.msra.mxu2 %v261_v20 }
  0xa8   :  { %333 = vmatmul.msk.f32.vlgmr.msra.gmra.mxu0 %vm130_vm3, %v124_v22  ;;  %302 = vmatpush.msra.mxu3 %v264_v19  ;;  %v259_v22 = vld [vmem:[#allocation10 + $0x10] sm:$0xff] }
  0xa9   :  { %284 = vmatpush.msra.mxu2 %v259_v22 }
  0xaa   :  { %303 = vmatpush.msra.mxu3 %v262_v21 }
 0x125   :  { %v151_v24 = vpop.f32.mrf.mxu0 }
 0x126   :  { %v152_v25 = vadd.f32 %v151_v24, %v129_v23  ;;  %v260_v23 = vld [vmem:[#allocation10 + $0x18] sm:$0xff]  ;;  %v257_v24 = vld [vmem:[#allocation10] sm:$0xff] }
 0x127   :  { %304 = vmatpush.msra.mxu3 %v260_v23  ;;  %285 = vmatpush.msra.mxu2 %v257_v24 }
 0x128   :  { %v155_v26 = vmin.f32 %v152_v25, 0.0  ;;  %vm154_vm4 = vcmp.gt.f32.partialorder %v152_v25, 0.0 }
 0x12a   :  { %v156_v27 = vmul.f32 1.442695, %v155_v26 }
 0x12c   :  { %352 = vpow2.f32 %v156_v27 }
 0x12d   :  { %354 = vrcp.f32 %v523_v34 }
 0x132   :  { %v353_v28 = vpop.eup %352 }
 0x133   :  { %v334_v29 = vadd.f32 -1.0, %v353_v28  ;;  %v355_v35 = vpop.eup %354 }
 0x134   :  { %v166_v36 = vmul.f32 32.0, %v355_v35  ;;  %vm170_vm5 = vweird.f32 %v355_v35 }
 0x135   :  { %v159_v30 = vmul.f32 1.6732632, %v334_v29 }
 0x136   :  { %v167_v37 = vsub.f32 1.0, %v166_v36  ;;  %v253_v36 = vperm.slane %v578_v1, 7 }
 0x137   :  { %v160_v31 = vsel %vm154_vm4, %v152_v25, %v159_v30  ;;  %v258_v25 = vld [vmem:[#allocation10 + $0x8] sm:$0xff] }
 0x138   :  { %v161_v32 = vmul.f32 1.050701, %v160_v31  ;;  %v168_v38 = vmul.f32 %v355_v35, %v167_v37  ;;  %305 = vmatpush.msra.mxu3 %v258_v25 }
 0x13a   :  { %v162_v33 = vsel %vm130_vm3, %v161_v32, 0.0  ;;  %v169_v39 = vadd.f32 %v355_v35, %v168_v38 }
 0x13b   :  { %163 = vadd.xlane.f32.xlu1 %v162_v33 }
 0x13c   :  { %v587_v40 = vsel %vm170_vm5, %v355_v35, %v169_v39  ;;  %v99_v35 = vld [vmem:[#allocation5 + $0x10] sm:$0x3] }
 0x13d   :  { %v255_v39 = vperm.slane %v99_v35, 0 }
 0x1ae   :  { %v164_v41 = vpop.xlane.xlu1 %163 }
 0x1af   :  { %v172_v42 = vmul.f32 %v587_v40, %v164_v41 }
 0x1b1   :  { %v173_v43 = vsub.f32 %v161_v32, %v172_v42 }
 0x1b3   :  { %v174_v44 = vmul.f32 %v173_v43, %v173_v43 }
 0x1b5   :  { %v175_v45 = vsel %vm130_vm3, %v174_v44, 0.0 }
 0x1b6   :  { %176 = vadd.xlane.f32.xlu1 %v175_v45 }
 0x229   :  { %v177_v50 = vpop.xlane.xlu1 %176 }
 0x22a   :  { %v178_v51 = vmul.f32 %v177_v50, %v587_v40 }
 0x22c   :  { %v179_v52 = vadd.f32 1e-05, %v178_v51 }
 0x22e   :  { %356 = vrsqrt.f32 %v179_v52  ;;  %vm186_vm7 = vweird.f32 %v179_v52 }
 0x234   :  { %v357_v53 = vpop.eup %356 }
 0x235   :  { %v181_v54 = vmul.f32 %v357_v53, %v179_v52  ;;  %vm187_vm6 = vweird.f32 %v357_v53 }
 0x236   :  { %vm188_vm8 = vmor %vm186_vm7, %vm187_vm6 }
 0x237   :  { %v182_v55 = vmul.f32 %v357_v53, %v181_v54 }
 0x239   :  { %v183_v56 = vmul.f32 0.5, %v182_v55 }
 0x23b   :  { %v184_v57 = vsub.f32 1.5, %v183_v56 }
 0x23d   :  { %v185_v58 = vmul.f32 %v357_v53, %v184_v57 }
 0x23f   :  { %v189_v60 = vsel %vm188_vm8, %v357_v53, %v185_v58 }
 0x240   :  { %v190_v61 = vmul.f32 %v189_v60, %v173_v43  ;;  %v265_v43 = vperm.slane %v99_v35, 1 }
 0x242   :  { %v192_v63 = vmul.f32 %v191_v59, %v190_v61 }
 0x244   :  { %v194_v0 = vadd.f32 %v193_v62, %v192_v63 }
 0x246   :  { %335 = vmatmul.msk.f32.vlgmr.msra.gmra.mxu1 %vm130_vm3, %v194_v0 }
 0x2c3   :  { %v220_v3 = vpop.f32.mrf.mxu1 }
 0x2c4   :  { %v221_v4 = vadd.f32 %v220_v3, %v199_v2 }
 0x2c6   :  { %v224_v5 = vmin.f32 %v221_v4, 0.0  ;;  %vm223_vm9 = vcmp.gt.f32.partialorder %v221_v4, 0.0 }
 0x2c8   :  { %v225_v6 = vmul.f32 1.442695, %v224_v5 }
 0x2ca   :  { %358 = vpow2.f32 %v225_v6 }
 0x2d0   :  { %v359_v7 = vpop.eup %358 }
 0x2d1   :  { %v336_v8 = vadd.f32 -1.0, %v359_v7 }
 0x2d3   :  { %v228_v9 = vmul.f32 1.6732632, %v336_v8 }
 0x2d5   :  { %v229_v10 = vsel %vm223_vm9, %v221_v4, %v228_v9 }
 0x2d6   :  { %v230_v11 = vmul.f32 1.050701, %v229_v10 }
 0x2d8   :  { %v231_v12 = vsel %vm130_vm3, %v230_v11, 0.0 }
 0x2d9   :  { %232 = vadd.xlane.f32.xlu2 %v231_v12 }
 0x34c   :  { %v233_v13 = vpop.xlane.xlu2 %232 }
 0x34d   :  { %v234_v14 = vmul.f32 %v233_v13, %v587_v40 }
 0x34f   :  { %v235_v15 = vsub.f32 %v230_v11, %v234_v14 }
 0x351   :  { %v236_v16 = vmul.f32 %v235_v15, %v235_v15 }
 0x353   :  { %v237_v17 = vsel %vm130_vm3, %v236_v16, 0.0 }
 0x354   :  { %238 = vadd.xlane.f32.xlu2 %v237_v17 }
 0x3c7   :  { %v239_v26 = vpop.xlane.xlu2 %238 }
 0x3c8   :  { %v240_v27 = vmul.f32 %v239_v26, %v587_v40  ;;  %v100_v40 = vld [vmem:[#allocation5 + $0x18] sm:$0x3] }
 0x3c9   :  { %v266_v44 = vperm.slane %v100_v40, 1 }
 0x3ca   :  { %v241_v28 = vadd.f32 1e-05, %v240_v27 }
 0x3cc   :  { %360 = vrsqrt.f32 %v241_v28  ;;  %vm248_vm11 = vweird.f32 %v241_v28 }
 0x3d2   :  { %v361_v29 = vpop.eup %360 }
 0x3d3   :  { %v243_v30 = vmul.f32 %v361_v29, %v241_v28  ;;  %vm249_vm10 = vweird.f32 %v361_v29 }
 0x3d4   :  { %vm250_vm12 = vmor %vm248_vm11, %vm249_vm10 }
 0x3d5   :  { %v244_v31 = vmul.f32 %v361_v29, %v243_v30 }
 0x3d7   :  { %v245_v32 = vmul.f32 0.5, %v244_v31 }
 0x3d9   :  { %v246_v33 = vsub.f32 1.5, %v245_v32 }
 0x3db   :  { %v247_v34 = vmul.f32 %v361_v29, %v246_v33 }
 0x3dd   :  { %v251_v37 = vsel %vm250_vm12, %v361_v29, %v247_v34 }
 0x3de   :  { %v252_v38 = vmul.f32 %v251_v37, %v235_v15 }
 0x3e0   :  { %v254_v41 = vmul.f32 %v253_v36, %v252_v38 }
 0x3e2   :  { %v256_v42 = vadd.f32 %v255_v39, %v254_v41 }
 0x3e4   :  { %337 = vmatmul.msk.f32.vlgmr.msra.gmra.mxu2 %vm130_vm3, %v256_v42  ;;  %338 = vmatmul.msk.f32.vlgmr.msra.gmra.mxu3 %vm130_vm3, %v256_v42 }
 0x467   :  { %v287_v45 = vpop.f32.mrf.mxu2  ;;  %v307_v1 = vpop.f32.mrf.mxu3 }
 0x468   :  { %v288_v46 = vadd.f32 %v287_v45, %v265_v43  ;;  %v308_v47 = vadd.f32 %v307_v1, %v266_v44 }
 0x46a   :  { %310 = vst [vmem:[#allocation11] sm:$0xff] %v288_v46 }
 0x46b   :  { %312 = vst.msk [vmem:[#allocation11 + $0x8] sm:$0xff] %vm311_vm13, %v308_v47 }
 0x46c   :  { %323 = dma.vmem_to_hbm [thread:$0]  %s319_s4, 256, %s321_s21, [#allocation4]  }
 0x46d   :  { %512 = dma.done.wait [#allocation4], 256  }
 0x46e   :  { %513 = vsyncadd [#allocation4], 4294967040 }
 0x46f   :  { %328 = vsyncpa [#allocation3], 1 }
 0x470   :  { %329 = vsyncpa [#allocation6], 1 }
 0x471   :  { %330 = vsyncpa [#allocation9], 1 }
 0x472   :  { %331 = vsyncpa [#allocation4], 1 }

</bundles_post_ra>
